<compile_context>
chip_gen: v5e
topology: v5e:2x2
jax: 0.10.0
libtpu: 0.0.40
codegen_flags: <defaults>
</compile_context>

<pallas_src>
import numpy as np
import jax
import jax.numpy as jnp
from jax.experimental import pallas as pl
from jax.experimental.pallas import tpu as pltpu

# ----------------------------- configuration ---------------------------------
QC_INDEX = 0
N_PARAMS = {0: 4}            # n_theta == n_qubits for the RY-layer ansatz used here
NQ = N_PARAMS[QC_INDEX]      # number of qubits / features
D = 2 ** NQ                  # statevector dimension (16)
M_FIT = 8                    # number of IsolationForest "fit_data" samples
NB_BATCH = 8                 # queries scored per batched pallas_call in the demo
SHIFT = float(np.pi / 2)     # parameter-shift (only used by backward in the original)
_INV_SQRT_D = float(1.0 / np.sqrt(D))


# ------------------------------ Pallas kernel ---------------------------------
def _make_hybrid_kernel(nb: int, m: int):
    """Kernel scoring `nb` query samples against `m` fit samples.

    u_ref : (D, m+nb, D) f32, u_ref[j, s, i] = U_s[i, j]; samples ordered
            [fit_0 .. fit_{m-1}, query_0 .. query_{nb-1}].
    z_ref : (D, NQ) f32, zsign[i, q] = +/-1 (Pauli-Z eigenvalue of basis state i).
    o_ref : (nb, 1) f32 anomaly scores.
    """
    def kernel(u_ref, z_ref, o_ref):
        # Statevector evolution: amps[s, i] = <i|U_s|+> = (1/sqrt(D)) * sum_j U_s[i, j].
        # s0 is uniform, so U @ s0 is a plain unrolled row reduce (no MXU matvec).
        acc = u_ref[0]
        for j in range(1, D):                 # D = 16, fully unrolled VPU adds
            acc = acc + u_ref[j]
        amps = acc * _INV_SQRT_D              # (m+nb, D)

        # NOTE: probs = amps**2 is only valid because the ansatz (RY + CNOT) is
        # strictly real; adding RZ/phase gates would require |amps|^2 instead.
        probs = amps * amps                   # (m+nb, D)

        # Per-sample Z expectations: exps[s, q] = sum_i probs[s, i] * zsign[i, q].
        exps = jnp.dot(probs, z_ref[...], preferred_element_type=jnp.float32)  # (m+nb, NQ)

        # Deterministic stand-in for IsolationForest.decision_function:
        # score_b = 0.5 - || exps_query_b - mean(exps_fit) ||.
        mean_fit = jnp.mean(exps[:m, :], axis=0, keepdims=True)  # (1, NQ)
        dev = exps[m:, :] - mean_fit                             # (nb, NQ)
        # NOTE: sqrt has an undefined gradient at dev == 0; forward-only here, so
        # no epsilon is added (keeps exact parity with the reference math).
        o_ref[...] = 0.5 - jnp.sqrt(jnp.sum(dev * dev, axis=1, keepdims=True))

    return kernel


def _hybrid_scores_pallas(u3, zsign, nb: int):
    _, s, _ = u3.shape
    m = s - nb
    return pl.pallas_call(
        _make_hybrid_kernel(nb, m),
        out_shape=jax.ShapeDtypeStruct((nb, 1), jnp.float32),
        in_specs=[
            pl.BlockSpec(memory_space=pltpu.MemorySpace.VMEM),
            pl.BlockSpec(memory_space=pltpu.MemorySpace.VMEM),
        ],
        out_specs=pl.BlockSpec(memory_space=pltpu.MemorySpace.VMEM),
    )(u3, zsign)


# ------------------------- circuit construction (glue) ------------------------
def _ry(a):
    c = jnp.cos(a / 2.0)
    s = jnp.sin(a / 2.0)
    return jnp.stack([jnp.stack([c, -s]), jnp.stack([s, c])])  # (2, 2), real


def _kron_all(mats):
    out = mats[0]
    for m in mats[1:]:
        out = jnp.kron(out, m)
    return out


def _cnot_full(control, target, nq):
    dim = 2 ** nq
    p = np.zeros((dim, dim), np.float32)
    for b in range(dim):
        cbit = (b >> (nq - 1 - control)) & 1
        b2 = b ^ (cbit << (nq - 1 - target))
        p[b2, b] = 1.0
    return p


# Entangling ring of CNOTs (constant, real).
_ENT_NP = np.eye(D, dtype=np.float32)
for _i in range(NQ):
    _ENT_NP = _cnot_full(_i, (_i + 1) % NQ, NQ) @ _ENT_NP
_ENT = jnp.asarray(_ENT_NP)


def circuit_unitary(x_angles, theta):
    """Full real-valued circuit unitary: CNOT-ring @ RY(theta) layer @ RY(x) layer."""
    u_enc = _kron_all([_ry(x_angles[i]) for i in range(NQ)])
    u_var = _kron_all([_ry(theta[i]) for i in range(NQ)])
    return _ENT @ u_var @ u_enc


def _zsign_matrix():
    # zsign[b, q] = +1 if bit q of basis state b is 0, else -1 (qubit 0 = MSB).
    z = np.zeros((D, NQ), np.float32)
    for b in range(D):
        for q in range(NQ):
            bit = (b >> (NQ - 1 - q)) & 1
            z[b, q] = 1.0 - 2.0 * bit
    return z


_ZSIGN = jnp.asarray(_zsign_matrix())   # (D, NQ), dense +/-1


def _stacked_unitaries_t(x_queries, fit_data, theta):
    """(D, m+nb, D) with u3[j, s, i] = U_s[i, j]; fit samples first, queries last."""
    xs_all = jnp.concatenate([fit_data, x_queries], axis=0)          # (m+nb, NQ)
    u_all = jax.vmap(lambda xx: circuit_unitary(xx, theta))(xs_all)  # (m+nb, D, D)
    return jnp.transpose(u_all, (2, 0, 1)).astype(jnp.float32)       # (D, m+nb, D)


@jax.jit
def hybrid_forward(x, theta, fit_data):
    """Original single-query forward: returns a (1,) float32 anomaly score."""
    u3 = _stacked_unitaries_t(x[None, :], fit_data, theta)
    return _hybrid_scores_pallas(u3, _ZSIGN, nb=1).reshape(1)


@jax.jit
def hybrid_forward_batch(xs, theta, fit_data):
    """Batched forward: anomaly scores for xs.shape[0] queries in ONE pallas_call."""
    nb = xs.shape[0]
    u3 = _stacked_unitaries_t(xs, fit_data, theta)
    return _hybrid_scores_pallas(u3, _ZSIGN, nb=nb).reshape(nb)


# ------------------------------ pure-JAX reference ----------------------------
def _reference_scores(x_queries, theta, fit_data):
    xs_all = jnp.concatenate([x_queries, fit_data], axis=0)
    u_all = jax.vmap(lambda xx: circuit_unitary(xx, theta))(xs_all)
    s0 = jnp.full((D,), 1.0 / np.sqrt(D), jnp.float32)
    amps = jnp.einsum("sij,j->si", u_all, s0)
    probs = amps * amps
    exps = probs @ _ZSIGN                                            # (S, NQ)
    nb = x_queries.shape[0]
    dev = exps[:nb] - jnp.mean(exps[nb:], axis=0)[None, :]
    return 0.5 - jnp.sqrt(jnp.sum(dev * dev, axis=1))


# ---------------------------------- main --------------------------------------
if __name__ == "__main__":
    key = jax.random.PRNGKey(0)
    k_theta, k_x, k_fit, k_q = jax.random.split(key, 4)

    # theta init mirrors torch.rand(n_theta) * 2*pi - pi  (uniform in [-pi, pi))
    theta = jax.random.uniform(k_theta, (NQ,), jnp.float32, -np.pi, np.pi)
    # input feature vector (data-encoding angles), synthetic fit_data, extra queries
    x = jax.random.uniform(k_x, (NQ,), jnp.float32, 0.0, np.pi)
    fit_data = jax.random.uniform(k_fit, (M_FIT, NQ), jnp.float32, 0.0, np.pi)
    x_extra = jax.random.uniform(k_q, (NB_BATCH - 1, NQ), jnp.float32, 0.0, np.pi)
    xs_batch = jnp.concatenate([x[None, :], x_extra], axis=0)        # (NB_BATCH, NQ)

    # single-query forward (original module semantics)
    result = hybrid_forward(x, theta, fit_data)
    jax.block_until_ready(result)

    # batched forward: many queries scored in one kernel launch
    result_b = hybrid_forward_batch(xs_batch, theta, fit_data)
    jax.block_until_ready(result_b)

    ref = _reference_scores(x[None, :], theta, fit_data)
    ref_b = _reference_scores(xs_batch, theta, fit_data)
    np.testing.assert_allclose(np.asarray(result), np.asarray(ref), rtol=1e-4, atol=1e-5)
    np.testing.assert_allclose(np.asarray(result_b), np.asarray(ref_b), rtol=1e-4, atol=1e-5)

    print("KERNEL_OK")
</pallas_src>

<mosaic_0001>
module attributes {stable_mosaic.version = 11 : i64} {
  func.func @kernel(%arg0: memref<16x9x16xf32, #tpu.memory_space<vmem>>, %arg1: memref<16x4xf32, #tpu.memory_space<vmem>>, %arg2: memref<1x1xf32, #tpu.memory_space<vmem>>) attributes {dimension_semantics = [], scalar_prefetch = 0 : i64, scratch_operands = 0 : i64, tpu.core_type = #tpu.core_type<tc>} {
    %c0 = arith.constant 0 : index
    %c0_0 = arith.constant 0 : index
    %c0_1 = arith.constant 0 : index
    %0 = vector.load %arg0[%c0, %c0_0, %c0_1] : memref<16x9x16xf32, #tpu.memory_space<vmem>>, vector<1x9x16xf32>
    %1 = vector.shape_cast %0 : vector<1x9x16xf32> to vector<9x16xf32>
    %c1 = arith.constant 1 : index
    %c0_2 = arith.constant 0 : index
    %c0_3 = arith.constant 0 : index
    %2 = vector.load %arg0[%c1, %c0_2, %c0_3] : memref<16x9x16xf32, #tpu.memory_space<vmem>>, vector<1x9x16xf32>
    %3 = vector.shape_cast %2 : vector<1x9x16xf32> to vector<9x16xf32>
    %4 = arith.addf %1, %3 : vector<9x16xf32>
    %c2 = arith.constant 2 : index
    %c0_4 = arith.constant 0 : index
    %c0_5 = arith.constant 0 : index
    %5 = vector.load %arg0[%c2, %c0_4, %c0_5] : memref<16x9x16xf32, #tpu.memory_space<vmem>>, vector<1x9x16xf32>
    %6 = vector.shape_cast %5 : vector<1x9x16xf32> to vector<9x16xf32>
    %7 = arith.addf %4, %6 : vector<9x16xf32>
    %c3 = arith.constant 3 : index
    %c0_6 = arith.constant 0 : index
    %c0_7 = arith.constant 0 : index
    %8 = vector.load %arg0[%c3, %c0_6, %c0_7] : memref<16x9x16xf32, #tpu.memory_space<vmem>>, vector<1x9x16xf32>
    %9 = vector.shape_cast %8 : vector<1x9x16xf32> to vector<9x16xf32>
    %10 = arith.addf %7, %9 : vector<9x16xf32>
    %c4 = arith.constant 4 : index
    %c0_8 = arith.constant 0 : index
    %c0_9 = arith.constant 0 : index
    %11 = vector.load %arg0[%c4, %c0_8, %c0_9] : memref<16x9x16xf32, #tpu.memory_space<vmem>>, vector<1x9x16xf32>
    %12 = vector.shape_cast %11 : vector<1x9x16xf32> to vector<9x16xf32>
    %13 = arith.addf %10, %12 : vector<9x16xf32>
    %c5 = arith.constant 5 : index
    %c0_10 = arith.constant 0 : index
    %c0_11 = arith.constant 0 : index
    %14 = vector.load %arg0[%c5, %c0_10, %c0_11] : memref<16x9x16xf32, #tpu.memory_space<vmem>>, vector<1x9x16xf32>
    %15 = vector.shape_cast %14 : vector<1x9x16xf32> to vector<9x16xf32>
    %16 = arith.addf %13, %15 : vector<9x16xf32>
    %c6 = arith.constant 6 : index
    %c0_12 = arith.constant 0 : index
    %c0_13 = arith.constant 0 : index
    %17 = vector.load %arg0[%c6, %c0_12, %c0_13] : memref<16x9x16xf32, #tpu.memory_space<vmem>>, vector<1x9x16xf32>
    %18 = vector.shape_cast %17 : vector<1x9x16xf32> to vector<9x16xf32>
    %19 = arith.addf %16, %18 : vector<9x16xf32>
    %c7 = arith.constant 7 : index
    %c0_14 = arith.constant 0 : index
    %c0_15 = arith.constant 0 : index
    %20 = vector.load %arg0[%c7, %c0_14, %c0_15] : memref<16x9x16xf32, #tpu.memory_space<vmem>>, vector<1x9x16xf32>
    %21 = vector.shape_cast %20 : vector<1x9x16xf32> to vector<9x16xf32>
    %22 = arith.addf %19, %21 : vector<9x16xf32>
    %c8 = arith.constant 8 : index
    %c0_16 = arith.constant 0 : index
    %c0_17 = arith.constant 0 : index
    %23 = vector.load %arg0[%c8, %c0_16, %c0_17] : memref<16x9x16xf32, #tpu.memory_space<vmem>>, vector<1x9x16xf32>
    %24 = vector.shape_cast %23 : vector<1x9x16xf32> to vector<9x16xf32>
    %25 = arith.addf %22, %24 : vector<9x16xf32>
    %c9 = arith.constant 9 : index
    %c0_18 = arith.constant 0 : index
    %c0_19 = arith.constant 0 : index
    %26 = vector.load %arg0[%c9, %c0_18, %c0_19] : memref<16x9x16xf32, #tpu.memory_space<vmem>>, vector<1x9x16xf32>
    %27 = vector.shape_cast %26 : vector<1x9x16xf32> to vector<9x16xf32>
    %28 = arith.addf %25, %27 : vector<9x16xf32>
    %c10 = arith.constant 10 : index
    %c0_20 = arith.constant 0 : index
    %c0_21 = arith.constant 0 : index
    %29 = vector.load %arg0[%c10, %c0_20, %c0_21] : memref<16x9x16xf32, #tpu.memory_space<vmem>>, vector<1x9x16xf32>
    %30 = vector.shape_cast %29 : vector<1x9x16xf32> to vector<9x16xf32>
    %31 = arith.addf %28, %30 : vector<9x16xf32>
    %c11 = arith.constant 11 : index
    %c0_22 = arith.constant 0 : index
    %c0_23 = arith.constant 0 : index
    %32 = vector.load %arg0[%c11, %c0_22, %c0_23] : memref<16x9x16xf32, #tpu.memory_space<vmem>>, vector<1x9x16xf32>
    %33 = vector.shape_cast %32 : vector<1x9x16xf32> to vector<9x16xf32>
    %34 = arith.addf %31, %33 : vector<9x16xf32>
    %c12 = arith.constant 12 : index
    %c0_24 = arith.constant 0 : index
    %c0_25 = arith.constant 0 : index
    %35 = vector.load %arg0[%c12, %c0_24, %c0_25] : memref<16x9x16xf32, #tpu.memory_space<vmem>>, vector<1x9x16xf32>
    %36 = vector.shape_cast %35 : vector<1x9x16xf32> to vector<9x16xf32>
    %37 = arith.addf %34, %36 : vector<9x16xf32>
    %c13 = arith.constant 13 : index
    %c0_26 = arith.constant 0 : index
    %c0_27 = arith.constant 0 : index
    %38 = vector.load %arg0[%c13, %c0_26, %c0_27] : memref<16x9x16xf32, #tpu.memory_space<vmem>>, vector<1x9x16xf32>
    %39 = vector.shape_cast %38 : vector<1x9x16xf32> to vector<9x16xf32>
    %40 = arith.addf %37, %39 : vector<9x16xf32>
    %c14 = arith.constant 14 : index
    %c0_28 = arith.constant 0 : index
    %c0_29 = arith.constant 0 : index
    %41 = vector.load %arg0[%c14, %c0_28, %c0_29] : memref<16x9x16xf32, #tpu.memory_space<vmem>>, vector<1x9x16xf32>
    %42 = vector.shape_cast %41 : vector<1x9x16xf32> to vector<9x16xf32>
    %43 = arith.addf %40, %42 : vector<9x16xf32>
    %c15 = arith.constant 15 : index
    %c0_30 = arith.constant 0 : index
    %c0_31 = arith.constant 0 : index
    %44 = vector.load %arg0[%c15, %c0_30, %c0_31] : memref<16x9x16xf32, #tpu.memory_space<vmem>>, vector<1x9x16xf32>
    %45 = vector.shape_cast %44 : vector<1x9x16xf32> to vector<9x16xf32>
    %46 = arith.addf %43, %45 : vector<9x16xf32>
    %cst = arith.constant 2.500000e-01 : f32
    %47 = vector.broadcast %cst : f32 to vector<9x16xf32>
    %48 = arith.mulf %46, %47 : vector<9x16xf32>
    %49 = arith.mulf %48, %48 : vector<9x16xf32>
    %c0_32 = arith.constant 0 : index
    %c0_33 = arith.constant 0 : index
    %50 = vector.load %arg1[%c0_32, %c0_33] : memref<16x4xf32, #tpu.memory_space<vmem>>, vector<16x4xf32>
    %cst_34 = arith.constant dense<0.000000e+00> : vector<9x4xf32>
    %51 = tpu.matmul %49, %50, %cst_34 {dimension_numbers = #tpu.dot_dimension_numbers<[1], [0], [0], [1], [0, 0, 1, 1], [], []>} : vector<9x16xf32>, vector<16x4xf32>, vector<9x4xf32> -> vector<9x4xf32>
    %52 = vector.extract_strided_slice %51 {offsets = [0, 0], sizes = [8, 4], strides = [1, 1]} : vector<9x4xf32> to vector<8x4xf32>
    %cst_35 = arith.constant dense<0.000000e+00> : vector<4xf32>
    %53 = vector.multi_reduction <add>, %52, %cst_35 [0] : vector<8x4xf32> to vector<4xf32>
    %54 = vector.shape_cast %53 : vector<4xf32> to vector<1x4xf32>
    %cst_36 = arith.constant 8.000000e+00 : f32
    %55 = vector.broadcast %cst_36 : f32 to vector<1x4xf32>
    %56 = arith.divf %54, %55 : vector<1x4xf32>
    %57 = vector.extract_strided_slice %51 {offsets = [8, 0], sizes = [1, 4], strides = [1, 1]} : vector<9x4xf32> to vector<1x4xf32>
    %58 = arith.subf %57, %56 : vector<1x4xf32>
    %59 = arith.mulf %58, %58 : vector<1x4xf32>
    %cst_37 = arith.constant dense<0.000000e+00> : vector<1xf32>
    %60 = vector.multi_reduction <add>, %59, %cst_37 [1] : vector<1x4xf32> to vector<1xf32>
    %61 = vector.shape_cast %60 : vector<1xf32> to vector<1x1xf32>
    %62 = math.sqrt %61 : vector<1x1xf32>
    %cst_38 = arith.constant 5.000000e-01 : f32
    %63 = vector.broadcast %cst_38 : f32 to vector<1x1xf32>
    %64 = arith.subf %63, %62 : vector<1x1xf32>
    %c0_39 = arith.constant 0 : index
    %c0_40 = arith.constant 0 : index
    %65 = vector.load %arg2[%c0_39, %c0_40] : memref<1x1xf32, #tpu.memory_space<vmem>>, vector<1x1xf32>
    tpu.vector_store %arg2[%c0_39, %c0_40], %64 {strides = array<i32>} : memref<1x1xf32, #tpu.memory_space<vmem>>, vector<1x1xf32>,
    return
  }
}

</mosaic_0001>

<bundles_post_ra>
// kernel: hybrid_forward.1
= control target key start
LH: loop header
LB: loop body
LE: loop exit
PB: predicated region body
PF: predicated region fallthrough
CT: control target
= control target key end

     0   :  { %s366_s0 = inlined_call_operand.vmem [shape: f32[16,9,16], index: 0, kind: input, shape index: {}]   ;;  %s367_s1 = inlined_call_operand.vmem [shape: f32[16,4], index: 1, kind: input, shape index: {}]   ;;  %s368_s2 = inlined_call_operand.hbm [shape: f32[1,1], index: 2, kind: output, shape index: {}]  }
   0x1   :  { %v94_v0 = vld [vmem:[%s367_s1 + $0x8] sm:$0xff]  ;;  %v93_v1 = vld [vmem:[%s367_s1] sm:$0xff]  ;;  %v178_v3 = vld [vmem:[%s366_s0 + $0x10] sm:$0xff] }
   0x2   :  { %v12_v2 = vld [vmem:[%s366_s0] sm:$0xff]  ;;  %116 = vmatpush.msra.mxu0 %v94_v0  ;;  %210 = vmatpush.msra.mxu1 %v94_v0  ;;  %v182_v6 = vld [vmem:[%s366_s0 + $0x30] sm:$0xff]  ;;  %v13_v10 = vld [vmem:[%s366_s0 + $0x8] sm:$0x1] }
   0x3   :  { %v180_v4 = vld [vmem:[%s366_s0 + $0x20] sm:$0xff]  ;;  %v17_v5 = vadd.f32 %v178_v3, %v12_v2  ;;  %v179_v11 = vld [vmem:[%s366_s0 + $0x18] sm:$0x1]  ;;  %v181_v12 = vld [vmem:[%s366_s0 + $0x28] sm:$0x1] }
   0x4   :  { %117 = vmatpush.msra.mxu0 %v93_v1  ;;  %211 = vmatpush.msra.mxu1 %v93_v1  ;;  %v184_v8 = vld [vmem:[%s366_s0 + $0x40] sm:$0xff]  ;;  %v186_v13 = vld [vmem:[%s366_s0 + $0x50] sm:$0xff]  ;;  %v18_v14 = vadd.f32 %v179_v11, %v13_v10  ;;  %v183_v16 = vld [vmem:[%s366_s0 + $0x38] sm:$0x1] }
   0x5   :  { %v22_v7 = vadd.f32 %v180_v4, %v17_v5  ;;  %v188_v17 = vld [vmem:[%s366_s0 + $0x60] sm:$0xff]  ;;  %v185_v20 = vld [vmem:[%s366_s0 + $0x48] sm:$0x1]  ;;  %v190_v21 = vld [vmem:[%s366_s0 + $0x70] sm:$0xff] }
   0x6   :  { %v23_v18 = vadd.f32 %v181_v12, %v18_v14 }
   0x7   :  { %v27_v9 = vadd.f32 %v182_v6, %v22_v7 }
   0x8   :  { %v28_v22 = vadd.f32 %v183_v16, %v23_v18 }
   0x9   :  { %v32_v15 = vadd.f32 %v184_v8, %v27_v9 }
   0xb   :  { %v37_v19 = vadd.f32 %v186_v13, %v32_v15 }
   0xc   :  { %7 = vsyncpa [#allocation3], 0  ;;  %v187_v24 = vld [vmem:[%s366_s0 + $0x58] sm:$0x1]  ;;  %v192_v25 = vld [vmem:[%s366_s0 + $0x80] sm:$0xff]  ;;  %v33_v26 = vadd.f32 %v185_v20, %v28_v22  ;;  %vm95_vm0 = vcmask 130048  }
   0xd   :  { %v42_v23 = vadd.f32 %v188_v17, %v37_v19  ;;  %v189_v28 = vld [vmem:[%s366_s0 + $0x68] sm:$0x1]  ;;  %v194_v29 = vld [vmem:[%s366_s0 + $0x90] sm:$0xff]  ;;  %v191_v32 = vld [vmem:[%s366_s0 + $0x78] sm:$0x1]  ;;  %v244_v4 = vmov 8.0  }
   0xe   :  { %v38_v30 = vadd.f32 %v187_v24, %v33_v26  ;;  %v196_v33 = vld [vmem:[%s366_s0 + $0xa0] sm:$0xff]  ;;  %v193_v36 = vld [vmem:[%s366_s0 + $0x88] sm:$0x1]  ;;  %v198_v37 = vld [vmem:[%s366_s0 + $0xb0] sm:$0xff]  ;;  %214 = vrcp.f32 %v244_v4  ;;  %vm125_vm1 = vcmask 31744   ;;  %vm143_vm3 = vcmask 24576  }
   0xf   :  { %v47_v27 = vadd.f32 %v190_v21, %v42_v23  ;;  %v195_v40 = vld [vmem:[%s366_s0 + $0x98] sm:$0x1]  ;;  %v200_v41 = vld [vmem:[%s366_s0 + $0xc0] sm:$0xff]  ;;  %v197_v44 = vld [vmem:[%s366_s0 + $0xa8] sm:$0x1]  ;;  %s169_s21 = sshll.u32 %s368_s2, 4  ;;  %s170_s21 = int_to_ptr.hbm [resolvable:$true] %s169_s21 }
  0x10   :  { %v43_v34 = vadd.f32 %v189_v28, %v38_v30  ;;  %v202_v45 = vld [vmem:[%s366_s0 + $0xd0] sm:$0xff]  ;;  %v199_v48 = vld [vmem:[%s366_s0 + $0xb8] sm:$0x1]  ;;  %v204_v49 = vld [vmem:[%s366_s0 + $0xe0] sm:$0xff]  ;;  %vm160_vm6 = vcmask 0  }
  0x11   :  { %v52_v31 = vadd.f32 %v192_v25, %v47_v27  ;;  %v201_v52 = vld [vmem:[%s366_s0 + $0xc8] sm:$0x1]  ;;  %v206_v53 = vld [vmem:[%s366_s0 + $0xf0] sm:$0xff]  ;;  %v203_v56 = vld [vmem:[%s366_s0 + $0xd8] sm:$0x1] }
  0x12   :  { %v48_v38 = vadd.f32 %v191_v32, %v43_v34  ;;  %v205_v59 = vld [vmem:[%s366_s0 + $0xe8] sm:$0x1]  ;;  %v207_v62 = vld [vmem:[%s366_s0 + $0xf8] sm:$0x1]  ;;  %s245_s0 = smov [#allocation2]  }
  0x13   :  { %v57_v35 = vadd.f32 %v194_v29, %v52_v31  ;;  %s167_s19 = sshll.u32 %s245_s0, 4  ;;  %s168_s19 = int_to_ptr.vmem [resolvable:$true] %s167_s19 }
  0x14   :  { %v53_v42 = vadd.f32 %v193_v36, %v48_v38  ;;  %v215_v5 = vpop.eup %214 }
  0x15   :  { %v62_v39 = vadd.f32 %v196_v33, %v57_v35  ;;  %v134_v6 = vmul.f32 8.0, %v215_v5  ;;  %vm138_vm2 = vweird.f32 %v215_v5 }
  0x16   :  { %v58_v46 = vadd.f32 %v195_v40, %v53_v42 }
  0x17   :  { %v67_v43 = vadd.f32 %v198_v37, %v62_v39  ;;  %v135_v7 = vsub.f32 1.0, %v134_v6 }
  0x18   :  { %v63_v50 = vadd.f32 %v197_v44, %v58_v46 }
  0x19   :  { %v72_v47 = vadd.f32 %v200_v41, %v67_v43  ;;  %v136_v11 = vmul.f32 %v215_v5, %v135_v7 }
  0x1a   :  { %v68_v54 = vadd.f32 %v199_v48, %v63_v50 }
  0x1b   :  { %v77_v51 = vadd.f32 %v202_v45, %v72_v47  ;;  %v137_v14 = vadd.f32 %v215_v5, %v136_v11 }
  0x1c   :  { %v73_v57 = vadd.f32 %v201_v52, %v68_v54 }
  0x1d   :  { %v82_v55 = vadd.f32 %v204_v49, %v77_v51  ;;  %v139_v17 = vsel %vm138_vm2, %v215_v5, %v137_v14 }
  0x1e   :  { %v78_v60 = vadd.f32 %v203_v56, %v73_v57 }
  0x1f   :  { %v87_v58 = vadd.f32 %v206_v53, %v82_v55 }
  0x20   :  { %v83_v63 = vadd.f32 %v205_v59, %v78_v60 }
  0x21   :  { %v89_v61 = vmul.f32 0.25, %v87_v58 }
  0x22   :  { %v88_v1 = vadd.f32 %v207_v62, %v83_v63 }
  0x23   :  { %v91_v0 = vmul.f32 %v89_v61, %v89_v61 }
  0x24   :  { %v90_v2 = vmul.f32 0.25, %v88_v1 }
  0x25   :  { %208 = vmatmul.msk.f32.vlgmr.msra.gmra.mxu0 %vm95_vm0, %v91_v0 }
  0x26   :  { %v92_v3 = vmul.f32 %v90_v2, %v90_v2 }
  0x28   :  { %209 = vmatmul.msk.f32.vlgmr.msra.gmra.mxu1 %vm95_vm0, %v92_v3 }
  0xa2   :  { %v119_v8 = vpop.f32.mrf.mxu0 }
  0xa3   :  { %v126_v9 = vsel %vm125_vm1, %v119_v8, 0.0 }
  0xa4   :  { %v127_v10 = vrot.slane %v126_v9, 4 }
  0xa5   :  { %v122_v19 = vpop.f32.mrf.mxu1 }
  0xa6   :  { %v128_v12 = vadd.f32 %v127_v10, %v126_v9 }
  0xa8   :  { %v129_v13 = vrot.slane %v128_v12, 2 }
  0xaa   :  { %v130_v15 = vadd.f32 %v129_v13, %v128_v12 }
  0xac   :  { %v131_v16 = vrot.slane %v130_v15, 1 }
  0xae   :  { %v132_v18 = vadd.f32 %v131_v16, %v130_v15 }
  0xb0   :  { %v140_v20 = vmul.f32 %v139_v17, %v132_v18 }
  0xb2   :  { %v141_v21 = vsub.f32 %v122_v19, %v140_v20 }
  0xb4   :  { %v142_v22 = vmul.f32 %v141_v21, %v141_v21 }
  0xb6   :  { %v144_v23 = vsel %vm143_vm3, %v142_v22, 0.0 }
  0xb7   :  { %145 = vadd.xlane.f32.xlu0 %v144_v23 }
 0x12a   :  { %v146_v24 = vpop.xlane.xlu0 %145 }
 0x12b   :  { %216 = vrsqrt.f32 %v146_v24  ;;  %vm154_vm4 = vcmp.eq.f32.partialorder %v146_v24, inf  ;;  %v157_v32 = vand.u32 2147483648, %v146_v24  ;;  %vm156_vm5 = vcmp.eq.f32.partialorder %v146_v24, 0.0 }
 0x131   :  { %v217_v25 = vpop.eup %216 }
 0x132   :  { %v148_v26 = vmul.f32 %v217_v25, %v146_v24 }
 0x134   :  { %v149_v27 = vmul.f32 %v217_v25, %v148_v26 }
 0x136   :  { %v150_v28 = vmul.f32 0.5, %v149_v27 }
 0x138   :  { %v151_v29 = vsub.f32 1.5, %v150_v28 }
 0x13a   :  { %v152_v30 = vmul.f32 %v217_v25, %v151_v29 }
 0x13c   :  { %v153_v31 = vmul.f32 %v152_v30, %v146_v24 }
 0x13e   :  { %v155_v33 = vsel %vm154_vm4, %v146_v24, %v153_v31 }
 0x13f   :  { %v158_v34 = vsel %vm156_vm5, %v157_v32, %v155_v33 }
 0x140   :  { %v159_v35 = vsub.f32 0.5, %v158_v34 }
 0x142   :  { %161 = vst.msk [vmem:[#allocation2] sm:$0x1] %vm160_vm6, %v159_v35 }
 0x143   :  { %172 = dma.vmem_to_hbm [thread:$0]  %s168_s19, 16, %s170_s21, [#allocation3]  }
 0x144   :  { %242 = dma.done.wait [#allocation3], 16  }
 0x145   :  { %243 = vsyncadd [#allocation3], 4294967280 }
 0x146   :  { %177 = vsyncpa [#allocation3], 1 }

</bundles_post_ra>
